<compile_context>
chip_gen: v5e
topology: v5e:2x2
jax: 0.10.0
libtpu: 0.0.40
codegen_flags: <defaults>
</compile_context>

<pallas_src>
import jax
import jax.numpy as jnp
from jax.experimental import pallas as pl
from jax.experimental.pallas import tpu as pltpu

LEAKY_SLOPE = 0.01  # PyTorch nn.LeakyReLU default negative_slope
BN_EPS = 1e-5
LANE = 128


def _round_up(x, m):
    return (x + m - 1) // m * m


def _bn_train(v, gamma, beta, inv_n):
    """Training-mode BatchNorm1d, two-pass (cancellation-safe) statistics."""
    mean = jnp.sum(v, axis=0, keepdims=True) * inv_n
    d = v - mean
    var = jnp.sum(d * d, axis=0, keepdims=True) * inv_n
    scale = jax.lax.rsqrt(var + BN_EPS) * gamma
    return d * scale + beta


def _bpredictor_kernel(x_ref, w1_ref, w2_ref, p_ref, out_ref):
    # p_ref packs rows (bias, gamma, beta); lanes [0:hp] = layer 1, [hp:] = layer 2.
    hp = w1_ref.shape[1]  # static, multiple of 128 -> aligned lane slices below
    inv_n = jnp.float32(1.0 / x_ref.shape[0])

    x = x_ref[...]

    # ---- Linear 1 (MXU, ragged K masked by Mosaic) + BN(n_hidden) + LeakyReLU ----
    h = jnp.dot(x, w1_ref[...], preferred_element_type=jnp.float32) + p_ref[0:1, 0:hp]
    h = _bn_train(h, p_ref[1:2, 0:hp], p_ref[2:3, 0:hp], inv_n)
    h = jnp.maximum(h, LEAKY_SLOPE * h)  # single vmax LeakyReLU

    # ---- Linear 2 (MXU) + BN(n_batch) ----
    y = jnp.dot(h, w2_ref[...], preferred_element_type=jnp.float32) + p_ref[0:1, hp:]
    out_ref[...] = _bn_train(y, p_ref[1:2, hp:], p_ref[2:3, hp:], inv_n).astype(out_ref.dtype)


def _full_spec(shape):
    # No grid: single invocation, each array's block is the whole array.
    return pl.BlockSpec(shape, lambda: (0,) * len(shape))


def init_params(key, n_input, n_batch, n_hidden=128):
    """Synthetic init mirroring the PyTorch module's parameter shapes.

    Linear weights are stored as (in_features, out_features) so the kernel
    does a plain x @ W.
    """
    k1, k2, k3, k4 = jax.random.split(key, 4)
    bound1 = 1.0 / jnp.sqrt(jnp.float32(n_input))
    bound2 = 1.0 / jnp.sqrt(jnp.float32(n_hidden))
    return {
        "w1": jax.random.uniform(k1, (n_input, n_hidden), jnp.float32, -bound1, bound1),
        "b1": jax.random.uniform(k2, (1, n_hidden), jnp.float32, -bound1, bound1),
        "gamma1": jnp.ones((1, n_hidden), jnp.float32),
        "beta1": jnp.zeros((1, n_hidden), jnp.float32),
        "w2": jax.random.uniform(k3, (n_hidden, n_batch), jnp.float32, -bound2, bound2),
        "b2": jax.random.uniform(k4, (1, n_batch), jnp.float32, -bound2, bound2),
        "gamma2": jnp.ones((1, n_batch), jnp.float32),
        "beta2": jnp.zeros((1, n_batch), jnp.float32),
    }


def pack_params(params):
    """One-time prep: pad OUTPUT feature dims to 128 lanes and pack all
    per-feature vectors into a single (3, hp+bp) array.

    The contraction (n_input) dim is NOT padded -> x is consumed unpadded.
    """
    n_input, n_hidden = params["w1"].shape
    n_batch = params["w2"].shape[1]
    hp = _round_up(n_hidden, LANE)
    bp = _round_up(n_batch, LANE)

    def pad_cols(a, cols):
        return jnp.pad(a, ((0, 0), (0, cols - a.shape[1])))

    # rows: 0=bias, 1=gamma, 2=beta ; lanes [0:hp]=layer1, [hp:hp+bp]=layer2
    p1 = pad_cols(jnp.concatenate([params["b1"], params["gamma1"], params["beta1"]], 0), hp)
    p2 = pad_cols(jnp.concatenate([params["b2"], params["gamma2"], params["beta2"]], 0), bp)
    return {
        "w1": pad_cols(params["w1"], hp),                      # (n_input, hp)
        "w2": jnp.pad(params["w2"],
                      ((0, hp - n_hidden), (0, bp - n_batch))),  # (hp, bp)
        "p": jnp.concatenate([p1, p2], axis=1),                # (3, hp+bp)
        "n_batch": n_batch,
    }


@jax.jit
def _bpredictor_call(x, w1, w2, p):
    n = x.shape[0]
    bp = w2.shape[1]
    args = (x, w1, w2, p)
    return pl.pallas_call(
        _bpredictor_kernel,
        out_shape=jax.ShapeDtypeStruct((n, bp), jnp.float32),
        in_specs=[_full_spec(a.shape) for a in args],
        out_specs=_full_spec((n, bp)),
        compiler_params=pltpu.CompilerParams(vmem_limit_bytes=32 << 20),
    )(*args)


def bpredictor_forward_padded(x, packed):
    """Returns the lane-padded (N, round_up(n_batch,128)) slab (no extra XLA ops)."""
    return _bpredictor_call(x, packed["w1"], packed["w2"], packed["p"])


def bpredictor_forward(x, packed):
    """x: (N, n_input) float32 -> (N, n_batch), matching the PyTorch module."""
    out = bpredictor_forward_padded(x, packed)
    # Drop lane padding outside the kernel (in-kernel store stays lane-dense).
    return out[:, :packed["n_batch"]]


def _reference_forward(x, p):
    """Pure-JAX reference of the PyTorch forward (training-mode BN)."""
    h = x @ p["w1"] + p["b1"]
    m = h.mean(0, keepdims=True)
    v = ((h - m) ** 2).mean(0, keepdims=True)
    h = (h - m) / jnp.sqrt(v + BN_EPS) * p["gamma1"] + p["beta1"]
    h = jnp.where(h >= 0, h, LEAKY_SLOPE * h)
    y = h @ p["w2"] + p["b2"]
    m2 = y.mean(0, keepdims=True)
    v2 = ((y - m2) ** 2).mean(0, keepdims=True)
    return (y - m2) / jnp.sqrt(v2 + BN_EPS) * p["gamma2"] + p["beta2"]


if __name__ == "__main__":
    key = jax.random.PRNGKey(0)
    kx, kp = jax.random.split(key)

    N, N_INPUT, N_HIDDEN, N_BATCH = 8, 16, 32, 8
    x = jax.random.normal(kx, (N, N_INPUT), jnp.float32)
    params = init_params(kp, N_INPUT, N_BATCH, N_HIDDEN)
    packed = pack_params(params)

    out = jax.block_until_ready(bpredictor_forward(x, packed))

    ref = _reference_forward(x, params)
    assert out.shape == (N, N_BATCH)
    assert jnp.allclose(out, ref, atol=1e-4, rtol=1e-4), "mismatch vs reference"

    print("KERNEL_OK")
</pallas_src>

<mosaic_0001>
module attributes {stable_mosaic.version = 11 : i64} {
  func.func @_bpredictor_kernel(%arg0: memref<8x16xf32, #tpu.memory_space<vmem>>, %arg1: memref<16x128xf32, #tpu.memory_space<vmem>>, %arg2: memref<128x128xf32, #tpu.memory_space<vmem>>, %arg3: memref<3x256xf32, #tpu.memory_space<vmem>>, %arg4: memref<8x128xf32, #tpu.memory_space<vmem>>) attributes {dimension_semantics = [], scalar_prefetch = 0 : i64, scratch_operands = 0 : i64, tpu.core_type = #tpu.core_type<tc>} {
    %c0 = arith.constant 0 : index
    %c0_0 = arith.constant 0 : index
    %0 = vector.load %arg0[%c0, %c0_0] : memref<8x16xf32, #tpu.memory_space<vmem>>, vector<8x16xf32>
    %c0_1 = arith.constant 0 : index
    %c0_2 = arith.constant 0 : index
    %1 = vector.load %arg1[%c0_1, %c0_2] : memref<16x128xf32, #tpu.memory_space<vmem>>, vector<16x128xf32>
    %cst = arith.constant dense<0.000000e+00> : vector<8x128xf32>
    %2 = tpu.matmul %0, %1, %cst {dimension_numbers = #tpu.dot_dimension_numbers<[1], [0], [0], [1], [0, 0, 1, 1], [], []>} : vector<8x16xf32>, vector<16x128xf32>, vector<8x128xf32> -> vector<8x128xf32>
    %c0_3 = arith.constant 0 : index
    %c0_4 = arith.constant 0 : index
    %3 = vector.load %arg3[%c0_3, %c0_4] : memref<3x256xf32, #tpu.memory_space<vmem>>, vector<1x128xf32>
    %4 = vector.broadcast %3 : vector<1x128xf32> to vector<8x128xf32>
    %5 = arith.addf %2, %4 : vector<8x128xf32>
    %c1 = arith.constant 1 : index
    %c0_5 = arith.constant 0 : index
    %6 = vector.load %arg3[%c1, %c0_5] : memref<3x256xf32, #tpu.memory_space<vmem>>, vector<1x128xf32>
    %c2 = arith.constant 2 : index
    %c0_6 = arith.constant 0 : index
    %7 = vector.load %arg3[%c2, %c0_6] : memref<3x256xf32, #tpu.memory_space<vmem>>, vector<1x128xf32>
    %cst_7 = arith.constant dense<0.000000e+00> : vector<128xf32>
    %8 = vector.multi_reduction <add>, %5, %cst_7 [0] : vector<8x128xf32> to vector<128xf32>
    %9 = vector.shape_cast %8 : vector<128xf32> to vector<1x128xf32>
    %cst_8 = arith.constant 1.250000e-01 : f32
    %10 = vector.broadcast %cst_8 : f32 to vector<1x128xf32>
    %11 = arith.mulf %9, %10 : vector<1x128xf32>
    %12 = vector.broadcast %11 : vector<1x128xf32> to vector<8x128xf32>
    %13 = arith.subf %5, %12 : vector<8x128xf32>
    %14 = arith.mulf %13, %13 : vector<8x128xf32>
    %cst_9 = arith.constant dense<0.000000e+00> : vector<128xf32>
    %15 = vector.multi_reduction <add>, %14, %cst_9 [0] : vector<8x128xf32> to vector<128xf32>
    %16 = vector.shape_cast %15 : vector<128xf32> to vector<1x128xf32>
    %cst_10 = arith.constant 1.250000e-01 : f32
    %17 = vector.broadcast %cst_10 : f32 to vector<1x128xf32>
    %18 = arith.mulf %16, %17 : vector<1x128xf32>
    %cst_11 = arith.constant 9.99999974E-6 : f32
    %19 = vector.broadcast %cst_11 : f32 to vector<1x128xf32>
    %20 = arith.addf %18, %19 : vector<1x128xf32>
    %21 = math.rsqrt %20 : vector<1x128xf32>
    %22 = arith.mulf %21, %6 : vector<1x128xf32>
    %23 = vector.broadcast %22 : vector<1x128xf32> to vector<8x128xf32>
    %24 = arith.mulf %13, %23 : vector<8x128xf32>
    %25 = vector.broadcast %7 : vector<1x128xf32> to vector<8x128xf32>
    %26 = arith.addf %24, %25 : vector<8x128xf32>
    %cst_12 = arith.constant 0.00999999977 : f32
    %27 = vector.broadcast %cst_12 : f32 to vector<8x128xf32>
    %28 = arith.mulf %27, %26 : vector<8x128xf32>
    %29 = arith.maximumf %26, %28 : vector<8x128xf32>
    %c0_13 = arith.constant 0 : index
    %c0_14 = arith.constant 0 : index
    %30 = vector.load %arg2[%c0_13, %c0_14] : memref<128x128xf32, #tpu.memory_space<vmem>>, vector<128x128xf32>
    %cst_15 = arith.constant dense<0.000000e+00> : vector<8x128xf32>
    %31 = tpu.matmul %29, %30, %cst_15 {dimension_numbers = #tpu.dot_dimension_numbers<[1], [0], [0], [1], [0, 0, 1, 1], [], []>} : vector<8x128xf32>, vector<128x128xf32>, vector<8x128xf32> -> vector<8x128xf32>
    %c0_16 = arith.constant 0 : index
    %c128 = arith.constant 128 : index
    %32 = vector.load %arg3[%c0_16, %c128] : memref<3x256xf32, #tpu.memory_space<vmem>>, vector<1x128xf32>
    %33 = vector.broadcast %32 : vector<1x128xf32> to vector<8x128xf32>
    %34 = arith.addf %31, %33 : vector<8x128xf32>
    %c1_17 = arith.constant 1 : index
    %c128_18 = arith.constant 128 : index
    %35 = vector.load %arg3[%c1_17, %c128_18] : memref<3x256xf32, #tpu.memory_space<vmem>>, vector<1x128xf32>
    %c2_19 = arith.constant 2 : index
    %c128_20 = arith.constant 128 : index
    %36 = vector.load %arg3[%c2_19, %c128_20] : memref<3x256xf32, #tpu.memory_space<vmem>>, vector<1x128xf32>
    %cst_21 = arith.constant dense<0.000000e+00> : vector<128xf32>
    %37 = vector.multi_reduction <add>, %34, %cst_21 [0] : vector<8x128xf32> to vector<128xf32>
    %38 = vector.shape_cast %37 : vector<128xf32> to vector<1x128xf32>
    %cst_22 = arith.constant 1.250000e-01 : f32
    %39 = vector.broadcast %cst_22 : f32 to vector<1x128xf32>
    %40 = arith.mulf %38, %39 : vector<1x128xf32>
    %41 = vector.broadcast %40 : vector<1x128xf32> to vector<8x128xf32>
    %42 = arith.subf %34, %41 : vector<8x128xf32>
    %43 = arith.mulf %42, %42 : vector<8x128xf32>
    %cst_23 = arith.constant dense<0.000000e+00> : vector<128xf32>
    %44 = vector.multi_reduction <add>, %43, %cst_23 [0] : vector<8x128xf32> to vector<128xf32>
    %45 = vector.shape_cast %44 : vector<128xf32> to vector<1x128xf32>
    %cst_24 = arith.constant 1.250000e-01 : f32
    %46 = vector.broadcast %cst_24 : f32 to vector<1x128xf32>
    %47 = arith.mulf %45, %46 : vector<1x128xf32>
    %cst_25 = arith.constant 9.99999974E-6 : f32
    %48 = vector.broadcast %cst_25 : f32 to vector<1x128xf32>
    %49 = arith.addf %47, %48 : vector<1x128xf32>
    %50 = math.rsqrt %49 : vector<1x128xf32>
    %51 = arith.mulf %50, %35 : vector<1x128xf32>
    %52 = vector.broadcast %51 : vector<1x128xf32> to vector<8x128xf32>
    %53 = arith.mulf %42, %52 : vector<8x128xf32>
    %54 = vector.broadcast %36 : vector<1x128xf32> to vector<8x128xf32>
    %55 = arith.addf %53, %54 : vector<8x128xf32>
    %c0_26 = arith.constant 0 : index
    %c0_27 = arith.constant 0 : index
    %56 = vector.load %arg4[%c0_26, %c0_27] : memref<8x128xf32, #tpu.memory_space<vmem>>, vector<8x128xf32>
    tpu.vector_store %arg4[%c0_26, %c0_27], %55 {strides = array<i32>} : memref<8x128xf32, #tpu.memory_space<vmem>>, vector<8x128xf32>,
    return
  }
}

</mosaic_0001>

<bundles_post_ra>
// kernel: _bpredictor_call.1
= control target key start
LH: loop header
LB: loop body
LE: loop exit
PB: predicated region body
PF: predicated region fallthrough
CT: control target
= control target key end

     0   :  { %9 = vsyncpa [#allocation3], 0  ;;  %s425_s0 = inlined_call_operand.hbm [shape: f32[8,16], index: 0, kind: input, shape index: {}]   ;;  %s426_s1 = inlined_call_operand.hbm [shape: f32[16,128], index: 1, kind: input, shape index: {}]   ;;  %s427_s2 = inlined_call_operand.hbm [shape: f32[128,128], index: 2, kind: input, shape index: {}]   ;;  %s428_s3 = inlined_call_operand.hbm [shape: f32[3,256], index: 3, kind: input, shape index: {}]   ;;  %s429_s4 = inlined_call_operand.hbm [shape: f32[8,128], index: 4, kind: output, shape index: {}]  }
   0x1   :  { %10 = vsyncpa [#allocation6], 0 }
   0x2   :  { %11 = vsyncpa [#allocation9], 0  ;;  %s28_s17 = sshll.u32 %s426_s1, 4  ;;  %s29_s17 = int_to_ptr.hbm [resolvable:$true] %s28_s17 }
   0x3   :  { %12 = vsyncpa [#allocation4], 0  ;;  %s378_s18 = smov [#allocation5]   ;;  %s18_s22 = sshll.u32 %s425_s0, 4  ;;  %s19_s22 = int_to_ptr.hbm [resolvable:$true] %s18_s22 }
   0x4   :  { %s30_s19 = sshll.u32 %s378_s18, 4  ;;  %s379_s23 = smov 128   ;;  %s31_s19 = int_to_ptr.vmem [resolvable:$true] %s30_s19 }
   0x5   :  { %s380_s24 = smov 8   ;;  %s381_s25 = smov [#allocation2]  }
   0x6   :  { %36 = dma.hbm_to_vmem [thread:$0]  %s29_s17, 256, %s31_s19, [#allocation6], %s379_s23, %s379_s23, %s380_s24  }
   0x7   :  { %s20_s26 = sshll.u32 %s381_s25, 4  ;;  %s41_s29 = sshll.u32 %s427_s2, 4  ;;  %s21_s26 = int_to_ptr.vmem [resolvable:$true] %s20_s26  ;;  %s42_s29 = int_to_ptr.hbm [resolvable:$true] %s41_s29 }
   0x8   :  { %23 = dma.hbm_to_vmem [thread:$0]  %s19_s22, 128, %s21_s26, [#allocation3]  }
   0x9   :  { %s55_s5 = sshll.u32 %s428_s3, 4  ;;  %s382_s6 = smov [#allocation7]   ;;  %s56_s5 = int_to_ptr.hbm [resolvable:$true] %s55_s5 }
   0xa   :  { %s43_s7 = sshll.u32 %s382_s6, 4  ;;  %s383_s0 = smov [#allocation8]   ;;  %s44_s7 = int_to_ptr.vmem [resolvable:$true] %s43_s7 }
   0xb   :  { %49 = dma.hbm_to_vmem [thread:$0]  %s42_s29, 2048, %s44_s7, [#allocation6], %s379_s23, %s379_s23, %s380_s24  }
   0xc   :  { %s57_s8 = sshll.u32 %s383_s0, 4  ;;  %s58_s8 = int_to_ptr.vmem [resolvable:$true] %s57_s8 }
   0xd   :  { %60 = dma.hbm_to_vmem [thread:$0]  %s56_s5, 128, %s58_s8, [#allocation9]  }
   0xe   :  { %370 = dma.done.wait [#allocation3], 128  }
   0xf   :  { %371 = vsyncadd [#allocation3], 4294967168 }
  0x10   :  { %372 = dma.done.wait [#allocation6], 2304  }
  0x11   :  { %373 = vsyncadd [#allocation6], 4294964992 }
  0x12   :  { %374 = dma.done.wait [#allocation9], 128  }
  0x13   :  { %375 = vsyncadd [#allocation9], 4294967168  ;;  %v79_v0 = vld [vmem:[#allocation5 + $0x8] sm:$0xff]  ;;  %v78_v1 = vld [vmem:[#allocation5] sm:$0xff]  ;;  %vm82_vm0 = vcmask 130048   ;;  %s384_s2 = smov [#allocation10]  }
  0x14   :  { %100 = vmatpush.msra.mxu0 %v79_v0  ;;  %v77_v2 = vld [vmem:[#allocation2] sm:$0xff]  ;;  %v242_v3 = vld [vmem:[#allocation8] ss:$0 sm:$0xff]  ;;  %v157_v7 = vld [vmem:[#allocation7 + $0x78] sm:$0xff]  ;;  %s220_s3 = sshll.u32 %s384_s2, 4  ;;  %s222_s11 = sshll.u32 %s429_s4, 4  ;;  %s221_s3 = int_to_ptr.vmem [resolvable:$true] %s220_s3  ;;  %s223_s11 = int_to_ptr.hbm [resolvable:$true] %s222_s11 }
  0x15   :  { %160 = vmatpush.msra.mxu1 %v157_v7  ;;  %v156_v9 = vld [vmem:[#allocation7 + $0x70] sm:$0xff]  ;;  %v155_v10 = vld [vmem:[#allocation7 + $0x68] sm:$0xff]  ;;  %v154_v12 = vld [vmem:[#allocation7 + $0x60] sm:$0xff] }
  0x16   :  { %101 = vmatpush.msra.mxu0 %v78_v1  ;;  %v153_v14 = vld [vmem:[#allocation7 + $0x58] sm:$0xff]  ;;  %v152_v16 = vld [vmem:[#allocation7 + $0x50] sm:$0xff]  ;;  %v151_v18 = vld [vmem:[#allocation7 + $0x48] sm:$0xff] }
  0x17   :  { %234 = vmatmul.msk.f32.vlgmr.msra.gmra.mxu0 %vm82_vm0, %v77_v2  ;;  %161 = vmatpush.msra.mxu1 %v156_v9  ;;  %v150_v20 = vld [vmem:[#allocation7 + $0x40] sm:$0xff]  ;;  %v149_v22 = vld [vmem:[#allocation7 + $0x38] sm:$0xff]  ;;  %v148_v24 = vld [vmem:[#allocation7 + $0x30] sm:$0xff] }
  0x18   :  { %v147_v26 = vld [vmem:[#allocation7 + $0x28] sm:$0xff]  ;;  %v146_v28 = vld [vmem:[#allocation7 + $0x20] sm:$0xff]  ;;  %v145_v30 = vld [vmem:[#allocation7 + $0x18] sm:$0xff] }
  0x19   :  { %162 = vmatpush.msra.mxu1 %v155_v10  ;;  %v144_v32 = vld [vmem:[#allocation7 + $0x10] sm:$0xff]  ;;  %v143_v34 = vld [vmem:[#allocation7 + $0x8] sm:$0xff]  ;;  %v142_v36 = vld [vmem:[#allocation7] sm:$0xff] }
  0x1a   :  { %v106_v44 = vld [vmem:[#allocation8 + $0x1] sm:$0x1]  ;;  %v243_v49 = vld [vmem:[#allocation8 + $0x2] ss:$0 sm:$0xff]  ;;  %v244_v54 = vld [vmem:[#allocation8 + $0x4] ss:$0 sm:$0xff] }
  0x1b   :  { %163 = vmatpush.msra.mxu1 %v154_v12 }
  0x1d   :  { %164 = vmatpush.msra.mxu1 %v153_v14 }
  0x1f   :  { %165 = vmatpush.msra.mxu1 %v152_v16 }
  0x21   :  { %166 = vmatpush.msra.mxu1 %v151_v18 }
  0x23   :  { %167 = vmatpush.msra.mxu1 %v150_v20  ;;  %v245_v20 = vld [vmem:[#allocation8 + $0x6] ss:$0 sm:$0xff] }
  0x25   :  { %168 = vmatpush.msra.mxu1 %v149_v22 }
  0x27   :  { %169 = vmatpush.msra.mxu1 %v148_v24 }
  0x29   :  { %170 = vmatpush.msra.mxu1 %v147_v26 }
  0x2b   :  { %171 = vmatpush.msra.mxu1 %v146_v28 }
  0x2d   :  { %172 = vmatpush.msra.mxu1 %v145_v30 }
  0x2f   :  { %173 = vmatpush.msra.mxu1 %v144_v32 }
  0x31   :  { %174 = vmatpush.msra.mxu1 %v143_v34 }
  0x33   :  { %175 = vmatpush.msra.mxu1 %v142_v36 }
  0x94   :  { %v103_v4 = vpop.f32.mrf.mxu0 }
  0x95   :  { %v104_v5 = vadd.f32 %v242_v3, %v103_v4 }
  0x97   :  { %v108_v6 = vrot.slane %v104_v5, 4 }
  0x99   :  { %v109_v8 = vadd.f32 %v108_v6, %v104_v5 }
  0x9b   :  { %v110_v11 = vrot.slane %v109_v8, 2 }
  0x9d   :  { %v111_v13 = vadd.f32 %v110_v11, %v109_v8 }
  0x9f   :  { %v112_v15 = vrot.slane %v111_v13, 1 }
  0xa1   :  { %v113_v17 = vadd.f32 %v112_v15, %v111_v13  ;;  %v180_v15 = vld [vmem:[#allocation8 + $0x5] sm:$0x1] }
  0xa3   :  { %v114_v19 = vmul.f32 0.125, %v113_v17 }
  0xa5   :  { %v115_v21 = vsub.f32 %v104_v5, %v114_v19 }
  0xa7   :  { %v116_v23 = vmul.f32 %v115_v21, %v115_v21 }
  0xa9   :  { %v117_v25 = vrot.slane %v116_v23, 4 }
  0xab   :  { %v118_v27 = vadd.f32 %v117_v25, %v116_v23 }
  0xad   :  { %v119_v29 = vrot.slane %v118_v27, 2 }
  0xaf   :  { %v120_v31 = vadd.f32 %v119_v29, %v118_v27 }
  0xb1   :  { %v121_v33 = vrot.slane %v120_v31, 1 }
  0xb3   :  { %v122_v35 = vadd.f32 %v121_v33, %v120_v31 }
  0xb5   :  { %v123_v37 = vmul.f32 0.125, %v122_v35 }
  0xb7   :  { %v124_v38 = vadd.f32 1e-05, %v123_v37 }
  0xb9   :  { %246 = vrsqrt.f32 %v124_v38  ;;  %vm131_vm2 = vweird.f32 %v124_v38 }
  0xbf   :  { %v247_v39 = vpop.eup %246 }
  0xc0   :  { %v126_v40 = vmul.f32 %v247_v39, %v124_v38  ;;  %vm132_vm1 = vweird.f32 %v247_v39 }
  0xc1   :  { %vm133_vm3 = vmor %vm131_vm2, %vm132_vm1 }
  0xc2   :  { %v127_v41 = vmul.f32 %v247_v39, %v126_v40 }
  0xc4   :  { %v128_v42 = vmul.f32 0.5, %v127_v41 }
  0xc6   :  { %v129_v43 = vsub.f32 1.5, %v128_v42 }
  0xc8   :  { %v130_v45 = vmul.f32 %v247_v39, %v129_v43 }
  0xca   :  { %v134_v46 = vsel %vm133_vm3, %v247_v39, %v130_v45 }
  0xcb   :  { %v135_v47 = vmul.f32 %v134_v46, %v106_v44 }
  0xcd   :  { %v136_v48 = vperm.slane %v135_v47, 0 }
  0xcf   :  { %v137_v50 = vmul.f32 %v136_v48, %v115_v21 }
  0xd1   :  { %v139_v51 = vadd.f32 %v243_v49, %v137_v50 }
  0xd3   :  { %v140_v52 = vmul.f32 0.01, %v139_v51 }
  0xd5   :  { %v141_v53 = vmax.f32 %v139_v51, %v140_v52 }
  0xd7   :  { %176 = vmatmul.f32.vlgmr.msra.gmra.mxu1 %v141_v53 }
 0x154   :  { %v177_v55 = vpop.f32.mrf.mxu1 }
 0x155   :  { %v178_v56 = vadd.f32 %v244_v54, %v177_v55 }
 0x157   :  { %v182_v57 = vrot.slane %v178_v56, 4 }
 0x159   :  { %v183_v58 = vadd.f32 %v182_v57, %v178_v56 }
 0x15b   :  { %v184_v59 = vrot.slane %v183_v58, 2 }
 0x15d   :  { %v185_v60 = vadd.f32 %v184_v59, %v183_v58 }
 0x15f   :  { %v186_v61 = vrot.slane %v185_v60, 1 }
 0x161   :  { %v187_v62 = vadd.f32 %v186_v61, %v185_v60 }
 0x163   :  { %v188_v63 = vmul.f32 0.125, %v187_v62 }
 0x165   :  { %v189_v0 = vsub.f32 %v178_v56, %v188_v63 }
 0x167   :  { %v190_v1 = vmul.f32 %v189_v0, %v189_v0 }
 0x169   :  { %v191_v2 = vrot.slane %v190_v1, 4 }
 0x16b   :  { %v192_v3 = vadd.f32 %v191_v2, %v190_v1 }
 0x16d   :  { %v193_v4 = vrot.slane %v192_v3, 2 }
 0x16f   :  { %v194_v5 = vadd.f32 %v193_v4, %v192_v3 }
 0x171   :  { %v195_v6 = vrot.slane %v194_v5, 1 }
 0x173   :  { %v196_v7 = vadd.f32 %v195_v6, %v194_v5 }
 0x175   :  { %v197_v8 = vmul.f32 0.125, %v196_v7 }
 0x177   :  { %v198_v9 = vadd.f32 1e-05, %v197_v8 }
 0x179   :  { %248 = vrsqrt.f32 %v198_v9  ;;  %vm205_vm5 = vweird.f32 %v198_v9 }
 0x17f   :  { %v249_v10 = vpop.eup %248 }
 0x180   :  { %v200_v11 = vmul.f32 %v249_v10, %v198_v9  ;;  %vm206_vm4 = vweird.f32 %v249_v10 }
 0x181   :  { %vm207_vm6 = vmor %vm205_vm5, %vm206_vm4 }
 0x182   :  { %v201_v12 = vmul.f32 %v249_v10, %v200_v11 }
 0x184   :  { %v202_v13 = vmul.f32 0.5, %v201_v12 }
 0x186   :  { %v203_v14 = vsub.f32 1.5, %v202_v13 }
 0x188   :  { %v204_v16 = vmul.f32 %v249_v10, %v203_v14 }
 0x18a   :  { %v208_v17 = vsel %vm207_vm6, %v249_v10, %v204_v16 }
 0x18b   :  { %v209_v18 = vmul.f32 %v208_v17, %v180_v15 }
 0x18d   :  { %v210_v19 = vperm.slane %v209_v18, 0 }
 0x18f   :  { %v211_v21 = vmul.f32 %v210_v19, %v189_v0 }
 0x191   :  { %v213_v22 = vadd.f32 %v245_v20, %v211_v21 }
 0x193   :  { %214 = vst [vmem:[#allocation10] sm:$0xff] %v213_v22 }
 0x194   :  { %225 = dma.vmem_to_hbm [thread:$0]  %s221_s3, 128, %s223_s11, [#allocation4]  }
 0x195   :  { %376 = dma.done.wait [#allocation4], 128  }
 0x196   :  { %377 = vsyncadd [#allocation4], 4294967168 }
 0x197   :  { %230 = vsyncpa [#allocation3], 1 }
 0x198   :  { %231 = vsyncpa [#allocation6], 1 }
 0x199   :  { %232 = vsyncpa [#allocation9], 1 }
 0x19a   :  { %233 = vsyncpa [#allocation4], 1 }

</bundles_post_ra>
